<compile_context>
chip_gen: v5e
topology: v5e:2x2
jax: 0.10.0
libtpu: 0.0.40
codegen_flags: <defaults>
</compile_context>

<pallas_src>
import functools

import jax
import jax.numpy as jnp
from jax.experimental import pallas as pl
from jax.experimental.pallas import tpu as pltpu


# --------------------------------- helpers -----------------------------------

def _round_up(x, m):
    return (x + m - 1) // m * m


def _padded_footprint_bytes(tm, p, C, out_pad, itemsize=4):
    """VMEM footprint with lane/sublane padding, x/out double-buffered."""
    x_tile = 2 * p * _round_up(tm, 8) * 128 * itemsize          # C pads to 128 lanes
    o_tile = 2 * _round_up(tm, 8) * out_pad * itemsize
    w_tile = p * _round_up(C, 8) * out_pad * itemsize            # resident
    b_tile = 8 * out_pad * itemsize                               # resident
    return x_tile + o_tile + w_tile + b_tile


def _pick_block_rows(B, f, p, C, out_pad, vmem_budget=24 << 20):
    """Largest divisor of f (mult-of-8 or f itself) whose padded footprint fits.

    Prefers TM == f (whole per-batch slab); guarantees >= 2 grid steps when a
    smaller divisor exists so both v7x TensorCores get work.
    """
    cands = [d for d in range(1, f + 1) if f % d == 0 and (d % 8 == 0 or d == f)]
    cands.sort(reverse=True)
    tm = next((d for d in cands
               if _padded_footprint_bytes(d, p, C, out_pad) <= vmem_budget),
              cands[-1])
    if B * (f // tm) < 2:                                         # review #6 (v7x)
        smaller = [d for d in cands if d <= f // 2]
        if smaller and _padded_footprint_bytes(smaller[0], p, C, out_pad) <= vmem_budget:
            tm = smaller[0]
    return tm


# --------------------------------- kernel ------------------------------------

def patch_merging_kernel(x_ref, w_ref, b_ref, o_ref, *, p):
    """One (batch, row-tile) step.

    x_ref: (p, TM, C)       -- the p sequence-strided slices feeding these rows
    w_ref: (p, C, OUT_PAD)  -- Linear weight, input axis split (p, C), lane-padded
    b_ref: (1, OUT_PAD)     -- Linear bias, lane-padded
    o_ref: (TM, OUT_PAD)    -- lane-dense output slab

    y[t, :] = sum_p x[p, t, :] @ W[p] + b
    == rearrange('b (p f) c -> b f (p c)') followed by Linear, with the
    rearrange absorbed into the contraction.  Accumulation stays in vregs.
    """
    acc = jnp.dot(x_ref[0], w_ref[0], preferred_element_type=jnp.float32)
    for pi in range(1, p):                       # static, unrolled (p is small)
        acc = acc + jnp.dot(x_ref[pi], w_ref[pi],
                            preferred_element_type=jnp.float32)
    o_ref[...] = (acc + b_ref[...]).astype(o_ref.dtype)


# ------------------------------ pallas wrapper --------------------------------

def patch_merging(x, w, b, *, downscaling_factor, block_rows=None):
    """PatchMerging forward. x: (B, L, C), w: (p*C, OUT), b: (OUT,)."""
    B, L, C = x.shape
    p = downscaling_factor
    assert L % p == 0, "sequence length must be divisible by downscaling_factor"
    f = L // p
    out = w.shape[-1]
    assert w.shape == (p * C, out)

    # Lane-dense output: pad OUT up to a multiple of 128 (zeros in extra lanes).
    out_pad = _round_up(out, 128)
    if out_pad != out:
        w = jnp.pad(w, ((0, 0), (0, out_pad - out)))
        b = jnp.pad(b, (0, out_pad - out))

    # Host-side *views* only (no data movement): expose the (p, f) split of the
    # sequence axis and the matching (p, C) split of the weight's input axis.
    xv = x.reshape(B, p, f, C)
    wv = w.reshape(p, C, out_pad)
    bv = b.reshape(1, out_pad)

    if block_rows is None:
        block_rows = _pick_block_rows(B, f, p, C, out_pad)
    TM = block_rows
    assert f % TM == 0 and (TM == f or TM % 8 == 0)

    # Only raise the scoped-VMEM limit if the padded footprint demands it.
    est = _padded_footprint_bytes(TM, p, C, out_pad)
    vmem_limit = None if est <= (24 << 20) else min(64 << 20, 2 * est)

    grid = (B, f // TM)
    y = pl.pallas_call(
        functools.partial(patch_merging_kernel, p=p),
        out_shape=jax.ShapeDtypeStruct((B, f, out_pad), x.dtype),
        grid=grid,
        in_specs=[
            # x: (B, p, f, C) -> per step a (p, TM, C) slab (batch dim squeezed)
            pl.BlockSpec((None, p, TM, C), lambda bi, ti: (bi, 0, ti, 0)),
            # weight / bias: constant index_map -> stay resident in VMEM
            pl.BlockSpec((p, C, out_pad), lambda bi, ti: (0, 0, 0)),
            pl.BlockSpec((1, out_pad), lambda bi, ti: (0, 0)),
        ],
        out_specs=pl.BlockSpec((None, TM, out_pad), lambda bi, ti: (bi, ti, 0)),
        compiler_params=pltpu.CompilerParams(
            dimension_semantics=("parallel", "parallel"),
            vmem_limit_bytes=vmem_limit),
    )(xv, wv, bv)

    return y[..., :out] if out_pad != out else y


# ------------------------------ pure-JAX reference -----------------------------

def patch_merging_ref(x, w, b, p):
    B, L, C = x.shape
    f = L // p
    # einops: 'b (p f) c -> b f (p c)'
    xr = x.reshape(B, p, f, C).transpose(0, 2, 1, 3).reshape(B, f, p * C)
    return xr @ w + b


# ----------------------------------- main --------------------------------------

if __name__ == "__main__":
    # PatchMerging(in_channels=4, out_channels=64, downscaling_factor=4)
    B, L, C = 2, 64, 4
    P, OUT = 4, 64

    key = jax.random.PRNGKey(0)
    kx, kw, kb = jax.random.split(key, 3)
    x = jax.random.normal(kx, (B, L, C), dtype=jnp.float32)
    w = 0.02 * jax.random.normal(kw, (P * C, OUT), dtype=jnp.float32)
    b = 0.02 * jax.random.normal(kb, (OUT,), dtype=jnp.float32)

    fwd = jax.jit(functools.partial(patch_merging, downscaling_factor=P))
    y = fwd(x, w, b)
    jax.block_until_ready(y)

    assert y.shape == (B, L // P, OUT)
    assert bool(jnp.all(jnp.isfinite(y)))

    y_ref = patch_merging_ref(x, w, b, P)
    assert bool(jnp.allclose(y, y_ref, atol=1e-5, rtol=1e-5)), "mismatch vs reference"

    print("KERNEL_OK")
</pallas_src>

<mosaic_0001>
module attributes {stable_mosaic.version = 11 : i64} {
  func.func @patch_merging_kernel(%arg0: i32, %arg1: i32, %arg2: memref<1x4x16x4xf32, #tpu.memory_space<vmem>>, %arg3: memref<4x4x128xf32, #tpu.memory_space<vmem>>, %arg4: memref<1x128xf32, #tpu.memory_space<vmem>>, %arg5: memref<1x16x128xf32, #tpu.memory_space<vmem>>) attributes {dimension_semantics = [#tpu.dimension_semantics<parallel>, #tpu.dimension_semantics<parallel>], iteration_bounds = array<i64: 2, 1>, scalar_prefetch = 0 : i64, scratch_operands = 0 : i64, tpu.core_type = #tpu.core_type<tc>, window_params = [{transform_indices = @transform_0, window_bounds = array<i64: 1, 4, 16, 4>}, {pipeline_mode = #tpu.pipeline_mode<synchronous>, transform_indices = @transform_1, window_bounds = array<i64: 4, 4, 128>}, {pipeline_mode = #tpu.pipeline_mode<synchronous>, transform_indices = @transform_2, window_bounds = array<i64: 1, 128>}, {transform_indices = @transform_3, window_bounds = array<i64: 1, 16, 128>}]} {
    %c0 = arith.constant 0 : index
    %c0_0 = arith.constant 0 : index
    %c0_1 = arith.constant 0 : index
    %c0_2 = arith.constant 0 : index
    %0 = vector.load %arg2[%c0, %c0_0, %c0_1, %c0_2] : memref<1x4x16x4xf32, #tpu.memory_space<vmem>>, vector<1x1x16x4xf32>
    %1 = vector.shape_cast %0 : vector<1x1x16x4xf32> to vector<16x4xf32>
    %c0_3 = arith.constant 0 : index
    %c0_4 = arith.constant 0 : index
    %c0_5 = arith.constant 0 : index
    %2 = vector.load %arg3[%c0_3, %c0_4, %c0_5] : memref<4x4x128xf32, #tpu.memory_space<vmem>>, vector<1x4x128xf32>
    %3 = vector.shape_cast %2 : vector<1x4x128xf32> to vector<4x128xf32>
    %cst = arith.constant dense<0.000000e+00> : vector<16x128xf32>
    %4 = tpu.matmul %1, %3, %cst {dimension_numbers = #tpu.dot_dimension_numbers<[1], [0], [0], [1], [0, 0, 1, 1], [], []>} : vector<16x4xf32>, vector<4x128xf32>, vector<16x128xf32> -> vector<16x128xf32>
    %c0_6 = arith.constant 0 : index
    %c1 = arith.constant 1 : index
    %c0_7 = arith.constant 0 : index
    %c0_8 = arith.constant 0 : index
    %5 = vector.load %arg2[%c0_6, %c1, %c0_7, %c0_8] : memref<1x4x16x4xf32, #tpu.memory_space<vmem>>, vector<1x1x16x4xf32>
    %6 = vector.shape_cast %5 : vector<1x1x16x4xf32> to vector<16x4xf32>
    %c1_9 = arith.constant 1 : index
    %c0_10 = arith.constant 0 : index
    %c0_11 = arith.constant 0 : index
    %7 = vector.load %arg3[%c1_9, %c0_10, %c0_11] : memref<4x4x128xf32, #tpu.memory_space<vmem>>, vector<1x4x128xf32>
    %8 = vector.shape_cast %7 : vector<1x4x128xf32> to vector<4x128xf32>
    %cst_12 = arith.constant dense<0.000000e+00> : vector<16x128xf32>
    %9 = tpu.matmul %6, %8, %cst_12 {dimension_numbers = #tpu.dot_dimension_numbers<[1], [0], [0], [1], [0, 0, 1, 1], [], []>} : vector<16x4xf32>, vector<4x128xf32>, vector<16x128xf32> -> vector<16x128xf32>
    %10 = arith.addf %4, %9 : vector<16x128xf32>
    %c0_13 = arith.constant 0 : index
    %c2 = arith.constant 2 : index
    %c0_14 = arith.constant 0 : index
    %c0_15 = arith.constant 0 : index
    %11 = vector.load %arg2[%c0_13, %c2, %c0_14, %c0_15] : memref<1x4x16x4xf32, #tpu.memory_space<vmem>>, vector<1x1x16x4xf32>
    %12 = vector.shape_cast %11 : vector<1x1x16x4xf32> to vector<16x4xf32>
    %c2_16 = arith.constant 2 : index
    %c0_17 = arith.constant 0 : index
    %c0_18 = arith.constant 0 : index
    %13 = vector.load %arg3[%c2_16, %c0_17, %c0_18] : memref<4x4x128xf32, #tpu.memory_space<vmem>>, vector<1x4x128xf32>
    %14 = vector.shape_cast %13 : vector<1x4x128xf32> to vector<4x128xf32>
    %cst_19 = arith.constant dense<0.000000e+00> : vector<16x128xf32>
    %15 = tpu.matmul %12, %14, %cst_19 {dimension_numbers = #tpu.dot_dimension_numbers<[1], [0], [0], [1], [0, 0, 1, 1], [], []>} : vector<16x4xf32>, vector<4x128xf32>, vector<16x128xf32> -> vector<16x128xf32>
    %16 = arith.addf %10, %15 : vector<16x128xf32>
    %c0_20 = arith.constant 0 : index
    %c3 = arith.constant 3 : index
    %c0_21 = arith.constant 0 : index
    %c0_22 = arith.constant 0 : index
    %17 = vector.load %arg2[%c0_20, %c3, %c0_21, %c0_22] : memref<1x4x16x4xf32, #tpu.memory_space<vmem>>, vector<1x1x16x4xf32>
    %18 = vector.shape_cast %17 : vector<1x1x16x4xf32> to vector<16x4xf32>
    %c3_23 = arith.constant 3 : index
    %c0_24 = arith.constant 0 : index
    %c0_25 = arith.constant 0 : index
    %19 = vector.load %arg3[%c3_23, %c0_24, %c0_25] : memref<4x4x128xf32, #tpu.memory_space<vmem>>, vector<1x4x128xf32>
    %20 = vector.shape_cast %19 : vector<1x4x128xf32> to vector<4x128xf32>
    %cst_26 = arith.constant dense<0.000000e+00> : vector<16x128xf32>
    %21 = tpu.matmul %18, %20, %cst_26 {dimension_numbers = #tpu.dot_dimension_numbers<[1], [0], [0], [1], [0, 0, 1, 1], [], []>} : vector<16x4xf32>, vector<4x128xf32>, vector<16x128xf32> -> vector<16x128xf32>
    %22 = arith.addf %16, %21 : vector<16x128xf32>
    %c0_27 = arith.constant 0 : index
    %c0_28 = arith.constant 0 : index
    %23 = vector.load %arg4[%c0_27, %c0_28] : memref<1x128xf32, #tpu.memory_space<vmem>>, vector<1x128xf32>
    %24 = vector.broadcast %23 : vector<1x128xf32> to vector<16x128xf32>
    %25 = arith.addf %22, %24 : vector<16x128xf32>
    %c0_29 = arith.constant 0 : index
    %c0_30 = arith.constant 0 : index
    %c0_31 = arith.constant 0 : index
    %26 = vector.load %arg5[%c0_29, %c0_30, %c0_31] : memref<1x16x128xf32, #tpu.memory_space<vmem>>, vector<1x16x128xf32>
    %27 = vector.shape_cast %26 : vector<1x16x128xf32> to vector<16x128xf32>
    %28 = vector.shape_cast %25 : vector<16x128xf32> to vector<1x16x128xf32>
    tpu.vector_store %arg5[%c0_29, %c0_30, %c0_31], %28 {strides = array<i32>} : memref<1x16x128xf32, #tpu.memory_space<vmem>>, vector<1x16x128xf32>,
    return
  }
  func.func @transform_0(%arg0: i32, %arg1: i32) -> (i32, i32, i32, i32) {
    %c0_i32 = arith.constant 0 : i32
    %c0_i32_0 = arith.constant 0 : i32
    %c0_i32_1 = arith.constant 0 : i32
    return %arg0, %c0_i32, %arg1, %c0_i32_0 : i32, i32, i32, i32
  }
  func.func @transform_1(%arg0: i32, %arg1: i32) -> (i32, i32, i32) {
    %c0_i32 = arith.constant 0 : i32
    %c0_i32_0 = arith.constant 0 : i32
    %c0_i32_1 = arith.constant 0 : i32
    %c0_i32_2 = arith.constant 0 : i32
    return %c0_i32, %c0_i32_0, %c0_i32_1 : i32, i32, i32
  }
  func.func @transform_2(%arg0: i32, %arg1: i32) -> (i32, i32) {
    %c0_i32 = arith.constant 0 : i32
    %c0_i32_0 = arith.constant 0 : i32
    %c0_i32_1 = arith.constant 0 : i32
    return %c0_i32, %c0_i32_0 : i32, i32
  }
  func.func @transform_3(%arg0: i32, %arg1: i32) -> (i32, i32, i32) {
    %c0_i32 = arith.constant 0 : i32
    %c0_i32_0 = arith.constant 0 : i32
    return %arg0, %arg1, %c0_i32 : i32, i32, i32
  }
}

</mosaic_0001>

<bundles_post_ra>
// kernel: patch_merging.1
= control target key start
LH: loop header
LB: loop body
LE: loop exit
PB: predicated region body
PF: predicated region fallthrough
CT: control target
= control target key end

     0   :  { %8 = vsyncpa [#allocation3], 0  ;;  %s773_s0 = inlined_call_operand.vmem [shape: f32[2,4,16,4], index: 0, kind: input, shape index: {}]   ;;  %s774_s1 = inlined_call_operand.vmem [shape: f32[4,4,128], index: 1, kind: input, shape index: {}]   ;;  %s775_s2 = inlined_call_operand.vmem [shape: f32[1,128], index: 2, kind: input, shape index: {}]   ;;  %s776_s3 = inlined_call_operand.hbm [shape: f32[2,16,128], index: 3, kind: output, shape index: {}]  }
   0x1   :  { %10 = vsyncpa [#allocation3 + $0x1], 0  ;;  %s653_s12 = smov 0   ;;  %s655_s13 = smov 0  }
   0x2   :  { %s657_s14 = smov 0   ;;  %s659_s15 = smov 0  }
   0x3   :  { %s661_s16 = smov 0   ;;  %s663_s17 = smov 0  }
   0x4 LB: > { %s457_s18 = sadd.s32 4294967295, %s629_s17   ;;  %s458_s19 = sadd.s32 4294967294, %s629_s17   ;;  %s629_s17 = sphi %s663_s17, %s16_s17   ;;  %s625_s16 = sphi %s661_s16, %s783_s16   ;;  %s621_s15 = sphi %s659_s15, %s782_s15   ;;  %s617_s14 = sphi %s657_s14, %s781_s14   ;;  %s613_s13 = sphi %s655_s13, %s780_s13   ;;  %s609_s12 = sphi %s653_s12, %s779_s12  }
   0x5   : > { %s28_s20 = sadd.s32 1, %s625_s16  ;;  %s107_s21 = sadd.s32 1, %s617_s14 }
   0x6   : > { %p30_p0 = scmp.ge.s32.totalorder %s28_s20, 2  ;;  %p117_p1 = scmp.ne.s32.totalorder %s617_s14, %s613_s13 }
   0x7   : > { %p118_p2 = scmp.eq.s32.totalorder %s457_s18, 1  ;;  %p123_p3 = scmp.ne.s32.totalorder %s613_s13, %s609_s12 }
   0x8   : > { %s785_s20 = smov (%p30_p0, %s28_s20), 0  ;;  %p124_p5 = scmp.eq.s32.totalorder %s458_s19, 1 }
   0x9   : > { %p693_p4 = por %p118_p2, %p117_p1  ;;  %s102_s23 = ssub.s32 %s625_s16, %s785_s20 }
   0xa   : > { %p461_p6 = scmp.ge.s32.totalorder %s629_s17, 1  ;;  %p105_p7 = scmp.eq.s32.totalorder %s102_s23, 0 }
   0xb   : > { %p700_p8 = por %p124_p5, %p123_p3  ;;  %p161_p9 = scmp.lt.s32.totalorder %s629_s17, 3 }
   0xc   : > { %s706_s25 = scalar_select %p105_p7, %s617_s14, %s107_s21  }
   0xd   : > { %p162_p10 = pnand %p461_p6, %p161_p9 }
   0xe   : > { %p190_p11 = scmp.lt.s32.totalorder (!%p162_p10), %s621_s15, 1  ;;  %s186_s18 = sand.u32 (!%p162_p10), 1, %s613_s13  }
   0xf   : > { %165 = sbr.rel (%p162_p10) target bundleno = 175 (0xaf), region = 32  ;;  %s462_s19 = sshll.u32 (!%p162_p10), %s186_s18, 4 }
  0x10   : > { %s492_s26 = sshll.u32 (!%p162_p10), %s621_s15, 4  ;;  %s188_s30 = scalar_lea.vmem (!%p162_p10), [#allocation2], %s462_s19 }
  0x11   : > { %s374_s29 = scalar_lea.hbm (!%p162_p10), %s776_s3, %s492_s26  ;;  %s375_s4 = sshll.u32 (!%p162_p10), %s188_s30, 4  ;;  %s376_s4 = int_to_ptr.vmem [resolvable:$true] %s375_s4 }
  0x12   : > { %s377_s5 = sshll.u32 (!%p162_p10), %s374_s29, 4  ;;  %s571_s10 = scalar_lea.hbm (!%p162_p10), %s776_s3, 32  ;;  %s378_s5 = int_to_ptr.hbm [resolvable:$true] %s377_s5 }
  0x13   : > { %s565_s6 = sshra.s32 (!%p162_p10), %s378_s5, 4  ;;  %s566_s6 = int_to_ptr.hbm [resolvable:$true] %s565_s6 }
  0x14   : > { %vm215_vm0 = vcmask 1043456   ;;  %v476_v0 = vld [vmem:[%s774_s1 + $0x8] sm:$0xf]  ;;  %v482_v1 = vld [vmem:[%s774_s1 + $0xc] sm:$0xf]  ;;  %s191_s7 = scalar_select %p190_p11, %s621_s15, 1 }
  0x15   : > { %477 = vmatpush.msk.msra.mxu2 %vm215_vm0, %v476_v0  ;;  %v467_v2 = vld [vmem:[%s774_s1 + $0x4] sm:$0xf]  ;;  %v202_v3 = vld [vmem:[%s774_s1] sm:$0xf]  ;;  %483 = vmatpush.msk.msra.mxu3 %vm215_vm0, %v482_v1  ;;  %vm208_vm1 = vcmask 31744   ;;  %s361_s15 = scalar_lea.sflag [#allocation3], %s186_s18  ;;  %p572_p1 = scmp.lt.s32.totalorder %s566_s6, %s776_s3 }
  0x16   : > { %468 = vmatpush.msk.msra.mxu0 %vm215_vm0, %v467_v2  ;;  %471 = vmatpush.msk.msra.mxu1 %vm215_vm0, %v202_v3  ;;  %s491_s8 = sshll.u32 %s191_s7, 6  ;;  %v550_v18 = vld [vmem:[%s775_s2] ss:$0 sm:$0xff]  ;;  %s567_s7 = scalar_lea.hbm %s566_s6, 16 }
  0x17   : > { %s197_s11 = scalar_lea.vmem %s773_s0, %s491_s8  ;;  %p568_p12 = scmp.ne.s32.totalorder %s566_s6, %s567_s7 }
  0x18   : > { %v474_v4 = vld [vmem:[%s197_s11 + $0x20] sm:$0xff]  ;;  %v480_v5 = vld [vmem:[%s197_s11 + $0x30] sm:$0xff]  ;;  %v475_v8 = vld [vmem:[%s197_s11 + $0x28] sm:$0xff]  ;;  %p573_p2 = scmp.lt.s32.totalorder %s571_s10, %s567_s7 }
  0x19   : > { %v465_v6 = vld [vmem:[%s197_s11 + $0x10] sm:$0xff]  ;;  %478 = vmatmul.msk.f32.vlgmr.msra.gmra.mxu2 %vm208_vm1, %v474_v4  ;;  %484 = vmatmul.msk.f32.vlgmr.msra.gmra.mxu3 %vm208_vm1, %v480_v5  ;;  %v200_v7 = vld [vmem:[%s197_s11] sm:$0xff]  ;;  %v481_v9 = vld [vmem:[%s197_s11 + $0x38] sm:$0xff]  ;;  %p569_p13 = pnand %p568_p12, %p693_p4 }
  0x1a   : > { %469 = vmatmul.msk.f32.vlgmr.msra.gmra.mxu0 %vm208_vm1, %v465_v6  ;;  %472 = vmatmul.msk.f32.vlgmr.msra.gmra.mxu1 %vm208_vm1, %v200_v7  ;;  %v466_v10 = vld [vmem:[%s197_s11 + $0x18] sm:$0xff]  ;;  %v201_v11 = vld [vmem:[%s197_s11 + $0x8] sm:$0xff]  ;;  %p574_p3 = por %p573_p2, %p572_p1 }
  0x1b   : > { %p570_p0 = pneg %p569_p13 }
  0x1d   : > { %p575_p5 = pnand %p574_p3, %p570_p0 }
  0x21   : > { %479 = vmatmul.msk.f32.gmra.mxu2 %vm208_vm1, %v475_v8  ;;  %485 = vmatmul.msk.f32.gmra.mxu3 %vm208_vm1, %v481_v9 }
  0x22   : > { %470 = vmatmul.msk.f32.gmra.mxu0 %vm208_vm1, %v466_v10  ;;  %473 = vmatmul.msk.f32.gmra.mxu1 %vm208_vm1, %v201_v11 }
  0x97   : > { %v236_v12 = vpop.f32.mrf.mxu0  ;;  %v268_v13 = vpop.f32.mrf.mxu1 }
  0x98   : > { %v269_v14 = vadd.f32 %v268_v13, %v236_v12 }
  0x9c   : > { %v305_v15 = vpop.f32.mrf.mxu2  ;;  %v344_v16 = vpop.f32.mrf.mxu3 }
  0x9d   : > { %v311_v17 = vadd.f32 %v305_v15, %v269_v14 }
  0x9f   : > { %v350_v19 = vadd.f32 %v344_v16, %v311_v17  ;;  %v239_v20 = vpop.f32.mrf.mxu0  ;;  %v271_v21 = vpop.f32.mrf.mxu1 }
  0xa0   : > { %v272_v23 = vadd.f32 %v271_v21, %v239_v20 }
  0xa1   : > { %v356_v22 = vadd.f32 %v550_v18, %v350_v19 }
  0xa3   : > { %358 = vst [vmem:[%s188_s30] sm:$0xff] %v356_v22 }
  0xa4   : > { %v308_v24 = vpop.f32.mrf.mxu2  ;;  %v347_v25 = vpop.f32.mrf.mxu3 }
  0xa5   : > { %v312_v26 = vadd.f32 %v308_v24, %v272_v23 }
  0xa7   : > { %v351_v27 = vadd.f32 %v347_v25, %v312_v26 }
  0xa9   : > { %v357_v28 = vadd.f32 %v550_v18, %v351_v27 }
  0xab   : > { %359 = vst [vmem:[%s188_s30 + $0x8] sm:$0xff] %v357_v28 }
  0xac   : > { %578 = shalt.err (!%p575_p5)
}
  0xad   : > { %s631_s18 = smov 128   ;;  %s632_s21 = smov 8  }
  0xae   : > { %493 = dma.vmem_to_hbm [thread:$0]  (%p693_p4), %s376_s4, 256, %s378_s5, %s361_s15, %s631_s18, %s631_s18, %s632_s21  }
  0xaf PF: > { %p499_p6 = scmp.ge.s32.totalorder %s629_s17, 2  ;;  %s392_s23 = sand.u32 1, %s609_s12  }
  0xb0   : > { %s393_s26 = scalar_lea.sflag [#allocation3], %s392_s23 }
  0xb1   : > { %p496_p7 = pnand %p499_p6, %p700_p8 }
  0xb3   : > { %p497_p9 = pneg %p496_p7 }
  0xb5   : > { %604 = dma.done.wait (%p497_p9), %s393_s26, 256  }
  0xb6   : > { %606 = vsyncadd (%p497_p9), %s393_s26, 4294967040  ;;  %s16_s17 = sadd.s32 1, %s629_s17   ;;  %s779_s12 = smov %s613_s13 }
  0xb7   : > { %p13_p10 = scmp.ge.s32.totalorder %s16_s17, 4   ;;  %s780_s13 = smov %s617_s14 }
  0xb8   : > { %s781_s14 = smov %s706_s25  ;;  %s782_s15 = smov %s625_s16 }
  0xb9   : > { %s783_s16 = smov %s785_s20  ;;  %15 = sbr.rel (!%p13_p10) target bundleno = 4 (0x4), region = 73 }
  0xbe   :  { %399 = vsyncpa [#allocation3], 1 }
  0xbf   :  { %401 = vsyncpa [#allocation3 + $0x1], 1 }

</bundles_post_ra>
